<compile_context>
chip_gen: v6e
topology: v6e:2x2x1
jax: 0.10.0
libtpu: 0.0.40
codegen_flags: <defaults>
</compile_context>

<pallas_src>
import jax
import jax.numpy as jnp
from jax.experimental import pallas as pl
from jax.experimental.pallas import tpu as pltpu  # noqa: F401  (kept for TPU-specific params if needed)

W_CONST = 0.3  # self.w = torch.ones((2, 2)) * 0.3  -> constant, folded in-kernel


def sample_model_kernel(a_ref, b_ref, z_ref):
    # Fused elementwise: y = a*2 + b + 0.3  (single pass over one vreg).
    y = a_ref[...] * 2.0 + (b_ref[...] + W_CONST)

    # softmax(y.T, axis=-1) with softmax width 2 == sigmoid closed form:
    #   z[i, 0] = exp(y[0,i]) / (exp(y[0,i]) + exp(y[1,i]))
    #           = 1 / (1 + exp(y[1,i] - y[0,i]))
    #   z[i, 1] = 1 - z[i, 0]
    # No max/sum reductions, no divide-by-denominator; numerically stable
    # (exp overflow -> 0/1 saturation, same as max-subtracted softmax).
    d = y[1:2, :] - y[0:1, :]                       # (1, 2) sublane-row slices
    sig = 1.0 / (1.0 + jnp.exp(d))                  # (1, 2)  == z[:, 0] along lanes
    p = jnp.concatenate([sig, 1.0 - sig], axis=0)   # (2, 2), p[j, i] = z[i, j]
    z_ref[...] = p.T                                # single tiny transpose


def sample_model(a, b):
    n, m = a.shape  # (2, 2)
    full = pl.BlockSpec((n, m), lambda: (0, 0))
    return pl.pallas_call(
        sample_model_kernel,
        out_shape=jax.ShapeDtypeStruct((m, n), jnp.float32),
        grid=(),
        in_specs=[full, full],
        out_specs=pl.BlockSpec((m, n), lambda: (0, 0)),
    )(a, b)


if __name__ == "__main__":
    key = jax.random.PRNGKey(0)
    ka, kb = jax.random.split(key)

    # Module-implied shapes: a, b are (2, 2) to match w = ones((2, 2)) * 0.3
    a = jax.random.normal(ka, (2, 2), dtype=jnp.float32)
    b = jax.random.normal(kb, (2, 2), dtype=jnp.float32)

    z = sample_model(a, b)
    jax.block_until_ready(z)

    # Pure-JAX reference (same semantics as the PyTorch forward).
    y_ref = a * 2.0 + b + W_CONST
    z_ref = jax.nn.softmax(y_ref.T, axis=-1)
    assert jnp.allclose(z, z_ref, atol=1e-6), (z, z_ref)

    print("KERNEL_OK")
</pallas_src>

<mosaic_0001>
module attributes {stable_mosaic.version = 11 : i64} {
  func.func @sample_model_kernel(%arg0: memref<2x2xf32, #tpu.memory_space<vmem>>, %arg1: memref<2x2xf32, #tpu.memory_space<vmem>>, %arg2: memref<2x2xf32, #tpu.memory_space<vmem>>) attributes {dimension_semantics = [], scalar_prefetch = 0 : i64, scratch_operands = 0 : i64, tpu.core_type = #tpu.core_type<tc>} {
    %c0 = arith.constant 0 : index
    %c0_0 = arith.constant 0 : index
    %0 = vector.load %arg0[%c0, %c0_0] : memref<2x2xf32, #tpu.memory_space<vmem>>, vector<2x2xf32>
    %cst = arith.constant 2.000000e+00 : f32
    %1 = vector.broadcast %cst : f32 to vector<2x2xf32>
    %2 = arith.mulf %0, %1 : vector<2x2xf32>
    %c0_1 = arith.constant 0 : index
    %c0_2 = arith.constant 0 : index
    %3 = vector.load %arg1[%c0_1, %c0_2] : memref<2x2xf32, #tpu.memory_space<vmem>>, vector<2x2xf32>
    %cst_3 = arith.constant 3.000000e-01 : f32
    %4 = vector.broadcast %cst_3 : f32 to vector<2x2xf32>
    %5 = arith.addf %3, %4 : vector<2x2xf32>
    %6 = arith.addf %2, %5 : vector<2x2xf32>
    %7 = vector.extract_strided_slice %6 {offsets = [1, 0], sizes = [1, 2], strides = [1, 1]} : vector<2x2xf32> to vector<1x2xf32>
    %8 = vector.extract_strided_slice %6 {offsets = [0, 0], sizes = [1, 2], strides = [1, 1]} : vector<2x2xf32> to vector<1x2xf32>
    %9 = arith.subf %7, %8 : vector<1x2xf32>
    %10 = math.exp %9 : vector<1x2xf32>
    %cst_4 = arith.constant 1.000000e+00 : f32
    %11 = vector.broadcast %cst_4 : f32 to vector<1x2xf32>
    %12 = arith.addf %11, %10 : vector<1x2xf32>
    %cst_5 = arith.constant 1.000000e+00 : f32
    %13 = vector.broadcast %cst_5 : f32 to vector<1x2xf32>
    %14 = arith.divf %13, %12 : vector<1x2xf32>
    %cst_6 = arith.constant 1.000000e+00 : f32
    %15 = vector.broadcast %cst_6 : f32 to vector<1x2xf32>
    %16 = arith.subf %15, %14 : vector<1x2xf32>
    %17 = tpu.concatenate %14, %16 in 0 : vector<1x2xf32>, vector<1x2xf32> -> vector<2x2xf32>
    %18 = tpu.transpose %17, [1, 0] : vector<2x2xf32> -> vector<2x2xf32>
    %c0_7 = arith.constant 0 : index
    %c0_8 = arith.constant 0 : index
    %19 = vector.load %arg2[%c0_7, %c0_8] : memref<2x2xf32, #tpu.memory_space<vmem>>, vector<2x2xf32>
    tpu.vector_store %arg2[%c0_7, %c0_8], %18 {strides = array<i32>} : memref<2x2xf32, #tpu.memory_space<vmem>>, vector<2x2xf32>,
    return
  }
}

</mosaic_0001>

<bundles_post_ra>
// kernel: tpu_custom_call.1
= control target key start
LH: loop header
LB: loop body
LE: loop exit
PB: predicated region body
PF: predicated region fallthrough
CT: control target
= control target key end

     0   :  { %7 = vsyncpa [#allocation3], 0  ;;  %s207_s0 = inlined_call_operand.hbm [shape: f32[2,2], index: 0, kind: input, shape index: {}]   ;;  %s208_s1 = inlined_call_operand.hbm [shape: f32[2,2], index: 1, kind: input, shape index: {}]   ;;  %s209_s2 = inlined_call_operand.hbm [shape: f32[2,2], index: 2, kind: output, shape index: {}]  }
   0x1   :  { %8 = vsyncpa [#allocation6], 0 }
   0x2   :  { %9 = vsyncpa [#allocation4], 0  ;;  %s180_s9 = smov [#allocation2]   ;;  %s181_s11 = smov [#allocation5]  }
   0x3   :  { %s16_s10 = sshll.u32 %s180_s9, 4  ;;  %s26_s12 = sshll.u32 %s181_s11, 4  ;;  %s17_s10 = int_to_ptr.vmem [resolvable:$true] %s16_s10  ;;  %s27_s12 = int_to_ptr.vmem [resolvable:$true] %s26_s12 }
   0x4   :  { %s122_s13 = scalar_lea.vmem %s17_s10, 32  ;;  %p127_p1 = scmp.lt.s32.totalorder %s17_s10, %s17_s10 }
   0x5   :  { %p123_p0 = scmp.ne.s32.totalorder %s17_s10, %s122_s13  ;;  %p128_p2 = scmp.lt.s32.totalorder %s122_s13, %s122_s13 }
   0x7   :  { %p129_p3 = por %p128_p2, %p127_p1 }
   0x9   :  { %p130_p4 = pnand %p129_p3, %p123_p0 }
   0xb   :  { %133 = shalt.err (!%p130_p4)
}
   0xc   :  { %19 = dma.hbm_to_vmem [thread:$0]  %s207_s0, 32, %s17_s10, [#allocation3]  }
   0xd   :  { %s142_s16 = scalar_lea.vmem %s27_s12, 32  ;;  %p147_p6 = scmp.lt.s32.totalorder %s27_s12, %s27_s12 }
   0xe   :  { %p143_p5 = scmp.ne.s32.totalorder %s27_s12, %s142_s16  ;;  %p148_p7 = scmp.lt.s32.totalorder %s142_s16, %s142_s16 }
  0x10   :  { %p149_p8 = por %p148_p7, %p147_p6 }
  0x12   :  { %p150_p9 = pnand %p149_p8, %p143_p5 }
  0x14   :  { %153 = shalt.err (!%p150_p9)
}
  0x15   :  { %29 = dma.hbm_to_vmem [thread:$0]  %s208_s1, 32, %s27_s12, [#allocation6]  }
  0x16   :  { %174 = dma.done.wait [#allocation3], 32  }
  0x17   :  { %175 = vsyncadd [#allocation3], 4294967264 }
  0x18   :  { %176 = dma.done.wait [#allocation6], 32  }
  0x19   :  { %177 = vsyncadd [#allocation6], 4294967264  ;;  %v36_v0 = vld [vmem:[#allocation2] sm:$0x3]  ;;  %v38_v1 = vld [vmem:[#allocation5] sm:$0x3] }
  0x1a   :  { %v37_v2 = vmul.f32 2.0, %v36_v0  ;;  %v39_v3 = vadd.f32 0.3, %v38_v1  ;;  %vm54_vm0 = vcmask 1040384   ;;  %s182_s0 = smov [#allocation7]   ;;  %vm88_vm1 = vcmask 9216  }
  0x1b   :  { %s96_s1 = sshll.u32 %s182_s0, 4  ;;  %s97_s1 = int_to_ptr.vmem [resolvable:$true] %s96_s1 }
  0x1c   :  { %v40_v4 = vadd.f32 %v39_v3, %v37_v2  ;;  %s154_s19 = scalar_lea.vmem %s97_s1, 32  ;;  %p159_p11 = scmp.lt.s32.totalorder %s97_s1, %s97_s1 }
  0x1d   :  { %p155_p10 = scmp.ne.s32.totalorder %s97_s1, %s154_s19  ;;  %p160_p12 = scmp.lt.s32.totalorder %s154_s19, %s154_s19 }
  0x1e   :  { %v42_v5 = vrot.slane %v40_v4, 7 }
  0x1f   :  { %p161_p13 = por %p160_p12, %p159_p11 }
  0x20   :  { %v44_v6 = vsub.f32 %v40_v4, %v42_v5 }
  0x21   :  { %p162_p0 = pnand %p161_p13, %p155_p10 }
  0x22   :  { %v45_v7 = vmul.f32 1.442695, %v44_v6 }
  0x24   :  { %110 = vpow2.f32 %v45_v7 }
  0x31   :  { %v111_v8 = vpop.eup %110 }
  0x32   :  { %v47_v9 = vadd.f32 1.0, %v111_v8 }
  0x34   :  { %112 = vrcp.f32 %v47_v9 }
  0x41   :  { %v113_v10 = vpop.eup %112 }
  0x42   :  { %v50_v11 = vsub.f32 1.0, %v113_v10  ;;  %v52_v12 = vrot.slane %v113_v10, 1 }
  0x44   :  { %v55_v13 = vsel %vm54_vm0, %v52_v12, %v50_v11 }
  0x45   :  { %56 = vxpose.xlu0.b32.start.end [1/1] (short) (narrow) %v55_v13, 8 }
  0xc1   :  { %v72_v14 = vpop.trf.xlu0 }
  0xc2   :  { %89 = vst.msk [vmem:[#allocation7] sm:$0x3] %vm88_vm1, %v72_v14 }
  0xc3   :  { %165 = shalt.err (!%p162_p0)
}
  0xc4   :  { %99 = dma.vmem_to_hbm [thread:$0]  %s97_s1, 32, %s209_s2, [#allocation4]  }
  0xc5   :  { %178 = dma.done.wait [#allocation4], 32  }
  0xc6   :  { %179 = vsyncadd [#allocation4], 4294967264 }
  0xc7   :  { %103 = vsyncpa [#allocation3], 1 }
  0xc8   :  { %104 = vsyncpa [#allocation6], 1 }
  0xc9   :  { %105 = vsyncpa [#allocation4], 1 }

</bundles_post_ra>
